<compile_context>
chip_gen: v6e
topology: v6e:2x2x1
jax: 0.10.0
libtpu: 0.0.40
codegen_flags: <defaults>
</compile_context>

<pallas_src>
import functools

import jax
import jax.numpy as jnp
from jax.experimental import pallas as pl
from jax.experimental.pallas import tpu as pltpu


def _residual_unit_kernel(x_ref, w1_ref, b1_ref, w2_ref, b2_ref, s_ref, o_ref,
                          *, cin, cmid):
    # x_ref / o_ref: (cin, tile) in VMEM (channels on sublanes, pixels on lanes)
    # w1 (cin, cmid), b1 (cmid,), w2 (cmid, cin), b2 (cin,), s (2,) in SMEM
    lam_res = s_ref[0]
    lam_x = s_ref[1]

    x = x_ref[...].astype(jnp.float32)                     # (cin, tile)

    # reduction 1x1 conv on the VPU: mid[m, :] = sum_c w1[c, m] * x[c, :] + b1[m]
    mids = []
    for m in range(cmid):
        acc = x[0:1, :] * w1_ref[0, m] + b1_ref[m]
        for c in range(1, cin):
            acc = acc + x[c:c + 1, :] * w1_ref[c, m]
        mids.append(acc)                                   # each (1, tile)

    # expansion 1x1 conv + scaled residual add:
    #   out[c, :] = lamX * x[c, :] + lamRes * (sum_m w2[m, c] * mid[m, :] + b2[c])
    rows = []
    for c in range(cin):
        r = mids[0] * w2_ref[0, c] + b2_ref[c]
        for m in range(1, cmid):
            r = r + mids[m] * w2_ref[m, c]
        rows.append(lam_x * x[c:c + 1, :] + lam_res * r)

    o_ref[...] = jnp.concatenate(rows, axis=0).astype(o_ref.dtype)


def _pick_tile(hw, bytes_per_pixel, max_buffer_bytes=2 * 1024 * 1024):
    """Largest multiple-of-128 divisor of hw whose (cin, tile) buffer fits the cap.

    ~2 MiB per buffer keeps double-buffered input + output tiles well inside the
    scoped-VMEM defaults of v5e (16 MiB), v6e (32 MiB) and v7x (32 MiB).  Falls
    back to the full extent (always a legal block) if hw % 128 != 0.
    """
    cap_lanes = max(128, max_buffer_bytes // max(bytes_per_pixel, 1))
    best = None
    if hw % 128 == 0:
        n = hw // 128
        for d in range(1, n + 1):
            if n % d == 0 and d * 128 <= cap_lanes:
                best = d * 128
    return best if best is not None else hw


def residual_unit(x_nchw, w1, b1, w2, b2, lam_res, lam_x):
    """x_nchw: (B, Cin, H, W); w1: (Cin, Cmid); w2: (Cmid, Cin)."""
    B, Cin, H, W = x_nchw.shape
    Cmid = w1.shape[1]
    assert w1.shape == (Cin, Cmid) and w2.shape == (Cmid, Cin)

    HW = H * W
    x3d = x_nchw.reshape(B, Cin, HW)          # free reshape, no transpose, no pad

    tile = _pick_tile(HW, Cin * x_nchw.dtype.itemsize)
    n_blocks = HW // tile

    # Small parameters live in SMEM; pre-cast once here (not per grid step).
    w1f = w1.astype(jnp.float32)
    b1f = b1.reshape(Cmid).astype(jnp.float32)
    w2f = w2.astype(jnp.float32)
    b2f = b2.reshape(Cin).astype(jnp.float32)
    scales = jnp.stack([jnp.asarray(lam_res, dtype=jnp.float32),
                        jnp.asarray(lam_x, dtype=jnp.float32)])

    kernel = functools.partial(_residual_unit_kernel, cin=Cin, cmid=Cmid)
    smem_spec = pl.BlockSpec(memory_space=pltpu.MemorySpace.SMEM)

    out3d = pl.pallas_call(
        kernel,
        out_shape=jax.ShapeDtypeStruct((B, Cin, HW), x_nchw.dtype),
        grid_spec=pltpu.PrefetchScalarGridSpec(
            num_scalar_prefetch=0,
            grid=(B, n_blocks),
            in_specs=[
                pl.BlockSpec((None, Cin, tile), lambda b, p: (b, 0, p)),  # x tile
                smem_spec,   # w1
                smem_spec,   # b1
                smem_spec,   # w2
                smem_spec,   # b2
                smem_spec,   # (lamRes, lamX)
            ],
            out_specs=pl.BlockSpec((None, Cin, tile), lambda b, p: (b, 0, p)),
        ),
        compiler_params=pltpu.CompilerParams(
            dimension_semantics=("parallel", "parallel")),
    )(x3d, w1f, b1f, w2f, b2f, scales)

    return out3d.reshape(B, Cin, H, W)


if __name__ == "__main__":
    # Module config: inChannel = outChannel = 4, kernelSize = 1, bias = True
    B, Cin, H, W = 2, 4, 16, 16
    Cout = 4
    Cmid = Cout // 2
    lam_res, lam_x = 0.2, 1.0  # reScale = (lamRes, lamX)

    key = jax.random.PRNGKey(0)
    kx, k1, k2, k3, k4 = jax.random.split(key, 5)

    x = jax.random.normal(kx, (B, Cin, H, W), dtype=jnp.float32)
    # Conv2d 1x1 weights, stored as (in, out) matmul matrices.
    w1 = jax.random.normal(k1, (Cin, Cmid), dtype=jnp.float32) * 0.1
    b1 = jax.random.normal(k2, (Cmid,), dtype=jnp.float32) * 0.1
    w2 = jax.random.normal(k3, (Cmid, Cin), dtype=jnp.float32) * 0.1
    b2 = jax.random.normal(k4, (Cin,), dtype=jnp.float32) * 0.1

    out = residual_unit(x, w1, b1, w2, b2, lam_res, lam_x)
    out = jax.block_until_ready(out)

    # Pure-JAX reference (1x1 convs as einsums over NCHW).
    r = jnp.einsum("bchw,cd->bdhw", x, w1) + b1[None, :, None, None]
    r = jnp.einsum("bdhw,dc->bchw", r, w2) + b2[None, :, None, None]
    ref = lam_x * x + lam_res * r
    assert out.shape == (B, Cin, H, W)
    assert jnp.allclose(out, ref, atol=1e-5, rtol=1e-5)

    print("KERNEL_OK")
</pallas_src>

<mosaic_0001>
module attributes {stable_mosaic.version = 11 : i64} {
  func.func @_residual_unit_kernel(%arg0: i32, %arg1: i32, %arg2: memref<1x4x256xf32, #tpu.memory_space<vmem>>, %arg3: memref<4x2xf32, #tpu.memory_space<smem>>, %arg4: memref<2xf32, #tpu.memory_space<smem>>, %arg5: memref<2x4xf32, #tpu.memory_space<smem>>, %arg6: memref<4xf32, #tpu.memory_space<smem>>, %arg7: memref<2xf32, #tpu.memory_space<smem>>, %arg8: memref<1x4x256xf32, #tpu.memory_space<vmem>>) attributes {dimension_semantics = [#tpu.dimension_semantics<parallel>, #tpu.dimension_semantics<parallel>], iteration_bounds = array<i64: 2, 1>, scalar_prefetch = 0 : i64, scratch_operands = 0 : i64, tpu.core_type = #tpu.core_type<tc>, window_params = [{transform_indices = @transform_0, window_bounds = array<i64: 1, 4, 256>}, {transform_indices = @transform_1, window_bounds = array<i64: 4, 2>}, {transform_indices = @transform_2, window_bounds = array<i64: 2>}, {transform_indices = @transform_3, window_bounds = array<i64: 2, 4>}, {transform_indices = @transform_4, window_bounds = array<i64: 4>}, {transform_indices = @transform_5, window_bounds = array<i64: 2>}, {transform_indices = @transform_6, window_bounds = array<i64: 1, 4, 256>}]} {
    %c0 = arith.constant 0 : index
    %0 = memref.load %arg7[%c0] : memref<2xf32, #tpu.memory_space<smem>>
    %c1 = arith.constant 1 : index
    %1 = memref.load %arg7[%c1] : memref<2xf32, #tpu.memory_space<smem>>
    %c0_0 = arith.constant 0 : index
    %c0_1 = arith.constant 0 : index
    %c0_2 = arith.constant 0 : index
    %2 = vector.load %arg2[%c0_0, %c0_1, %c0_2] : memref<1x4x256xf32, #tpu.memory_space<vmem>>, vector<1x4x256xf32>
    %3 = vector.shape_cast %2 : vector<1x4x256xf32> to vector<4x256xf32>
    %4 = vector.extract_strided_slice %3 {offsets = [0, 0], sizes = [1, 256], strides = [1, 1]} : vector<4x256xf32> to vector<1x256xf32>
    %c0_3 = arith.constant 0 : index
    %c0_4 = arith.constant 0 : index
    %5 = memref.load %arg3[%c0_3, %c0_4] : memref<4x2xf32, #tpu.memory_space<smem>>
    %6 = vector.broadcast %5 : f32 to vector<1x256xf32>
    %7 = arith.mulf %4, %6 : vector<1x256xf32>
    %c0_5 = arith.constant 0 : index
    %8 = memref.load %arg4[%c0_5] : memref<2xf32, #tpu.memory_space<smem>>
    %9 = vector.broadcast %8 : f32 to vector<1x256xf32>
    %10 = arith.addf %7, %9 : vector<1x256xf32>
    %11 = vector.extract_strided_slice %3 {offsets = [1, 0], sizes = [1, 256], strides = [1, 1]} : vector<4x256xf32> to vector<1x256xf32>
    %c1_6 = arith.constant 1 : index
    %c0_7 = arith.constant 0 : index
    %12 = memref.load %arg3[%c1_6, %c0_7] : memref<4x2xf32, #tpu.memory_space<smem>>
    %13 = vector.broadcast %12 : f32 to vector<1x256xf32>
    %14 = arith.mulf %11, %13 : vector<1x256xf32>
    %15 = arith.addf %10, %14 : vector<1x256xf32>
    %16 = vector.extract_strided_slice %3 {offsets = [2, 0], sizes = [1, 256], strides = [1, 1]} : vector<4x256xf32> to vector<1x256xf32>
    %c2 = arith.constant 2 : index
    %c0_8 = arith.constant 0 : index
    %17 = memref.load %arg3[%c2, %c0_8] : memref<4x2xf32, #tpu.memory_space<smem>>
    %18 = vector.broadcast %17 : f32 to vector<1x256xf32>
    %19 = arith.mulf %16, %18 : vector<1x256xf32>
    %20 = arith.addf %15, %19 : vector<1x256xf32>
    %21 = vector.extract_strided_slice %3 {offsets = [3, 0], sizes = [1, 256], strides = [1, 1]} : vector<4x256xf32> to vector<1x256xf32>
    %c3 = arith.constant 3 : index
    %c0_9 = arith.constant 0 : index
    %22 = memref.load %arg3[%c3, %c0_9] : memref<4x2xf32, #tpu.memory_space<smem>>
    %23 = vector.broadcast %22 : f32 to vector<1x256xf32>
    %24 = arith.mulf %21, %23 : vector<1x256xf32>
    %25 = arith.addf %20, %24 : vector<1x256xf32>
    %26 = vector.extract_strided_slice %3 {offsets = [0, 0], sizes = [1, 256], strides = [1, 1]} : vector<4x256xf32> to vector<1x256xf32>
    %c0_10 = arith.constant 0 : index
    %c1_11 = arith.constant 1 : index
    %27 = memref.load %arg3[%c0_10, %c1_11] : memref<4x2xf32, #tpu.memory_space<smem>>
    %28 = vector.broadcast %27 : f32 to vector<1x256xf32>
    %29 = arith.mulf %26, %28 : vector<1x256xf32>
    %c1_12 = arith.constant 1 : index
    %30 = memref.load %arg4[%c1_12] : memref<2xf32, #tpu.memory_space<smem>>
    %31 = vector.broadcast %30 : f32 to vector<1x256xf32>
    %32 = arith.addf %29, %31 : vector<1x256xf32>
    %33 = vector.extract_strided_slice %3 {offsets = [1, 0], sizes = [1, 256], strides = [1, 1]} : vector<4x256xf32> to vector<1x256xf32>
    %c1_13 = arith.constant 1 : index
    %c1_14 = arith.constant 1 : index
    %34 = memref.load %arg3[%c1_13, %c1_14] : memref<4x2xf32, #tpu.memory_space<smem>>
    %35 = vector.broadcast %34 : f32 to vector<1x256xf32>
    %36 = arith.mulf %33, %35 : vector<1x256xf32>
    %37 = arith.addf %32, %36 : vector<1x256xf32>
    %38 = vector.extract_strided_slice %3 {offsets = [2, 0], sizes = [1, 256], strides = [1, 1]} : vector<4x256xf32> to vector<1x256xf32>
    %c2_15 = arith.constant 2 : index
    %c1_16 = arith.constant 1 : index
    %39 = memref.load %arg3[%c2_15, %c1_16] : memref<4x2xf32, #tpu.memory_space<smem>>
    %40 = vector.broadcast %39 : f32 to vector<1x256xf32>
    %41 = arith.mulf %38, %40 : vector<1x256xf32>
    %42 = arith.addf %37, %41 : vector<1x256xf32>
    %43 = vector.extract_strided_slice %3 {offsets = [3, 0], sizes = [1, 256], strides = [1, 1]} : vector<4x256xf32> to vector<1x256xf32>
    %c3_17 = arith.constant 3 : index
    %c1_18 = arith.constant 1 : index
    %44 = memref.load %arg3[%c3_17, %c1_18] : memref<4x2xf32, #tpu.memory_space<smem>>
    %45 = vector.broadcast %44 : f32 to vector<1x256xf32>
    %46 = arith.mulf %43, %45 : vector<1x256xf32>
    %47 = arith.addf %42, %46 : vector<1x256xf32>
    %c0_19 = arith.constant 0 : index
    %c0_20 = arith.constant 0 : index
    %48 = memref.load %arg5[%c0_19, %c0_20] : memref<2x4xf32, #tpu.memory_space<smem>>
    %49 = vector.broadcast %48 : f32 to vector<1x256xf32>
    %50 = arith.mulf %25, %49 : vector<1x256xf32>
    %c0_21 = arith.constant 0 : index
    %51 = memref.load %arg6[%c0_21] : memref<4xf32, #tpu.memory_space<smem>>
    %52 = vector.broadcast %51 : f32 to vector<1x256xf32>
    %53 = arith.addf %50, %52 : vector<1x256xf32>
    %c1_22 = arith.constant 1 : index
    %c0_23 = arith.constant 0 : index
    %54 = memref.load %arg5[%c1_22, %c0_23] : memref<2x4xf32, #tpu.memory_space<smem>>
    %55 = vector.broadcast %54 : f32 to vector<1x256xf32>
    %56 = arith.mulf %47, %55 : vector<1x256xf32>
    %57 = arith.addf %53, %56 : vector<1x256xf32>
    %58 = vector.extract_strided_slice %3 {offsets = [0, 0], sizes = [1, 256], strides = [1, 1]} : vector<4x256xf32> to vector<1x256xf32>
    %59 = vector.broadcast %1 : f32 to vector<1x256xf32>
    %60 = arith.mulf %59, %58 : vector<1x256xf32>
    %61 = vector.broadcast %0 : f32 to vector<1x256xf32>
    %62 = arith.mulf %61, %57 : vector<1x256xf32>
    %63 = arith.addf %60, %62 : vector<1x256xf32>
    %c0_24 = arith.constant 0 : index
    %c1_25 = arith.constant 1 : index
    %64 = memref.load %arg5[%c0_24, %c1_25] : memref<2x4xf32, #tpu.memory_space<smem>>
    %65 = vector.broadcast %64 : f32 to vector<1x256xf32>
    %66 = arith.mulf %25, %65 : vector<1x256xf32>
    %c1_26 = arith.constant 1 : index
    %67 = memref.load %arg6[%c1_26] : memref<4xf32, #tpu.memory_space<smem>>
    %68 = vector.broadcast %67 : f32 to vector<1x256xf32>
    %69 = arith.addf %66, %68 : vector<1x256xf32>
    %c1_27 = arith.constant 1 : index
    %c1_28 = arith.constant 1 : index
    %70 = memref.load %arg5[%c1_27, %c1_28] : memref<2x4xf32, #tpu.memory_space<smem>>
    %71 = vector.broadcast %70 : f32 to vector<1x256xf32>
    %72 = arith.mulf %47, %71 : vector<1x256xf32>
    %73 = arith.addf %69, %72 : vector<1x256xf32>
    %74 = vector.extract_strided_slice %3 {offsets = [1, 0], sizes = [1, 256], strides = [1, 1]} : vector<4x256xf32> to vector<1x256xf32>
    %75 = vector.broadcast %1 : f32 to vector<1x256xf32>
    %76 = arith.mulf %75, %74 : vector<1x256xf32>
    %77 = vector.broadcast %0 : f32 to vector<1x256xf32>
    %78 = arith.mulf %77, %73 : vector<1x256xf32>
    %79 = arith.addf %76, %78 : vector<1x256xf32>
    %c0_29 = arith.constant 0 : index
    %c2_30 = arith.constant 2 : index
    %80 = memref.load %arg5[%c0_29, %c2_30] : memref<2x4xf32, #tpu.memory_space<smem>>
    %81 = vector.broadcast %80 : f32 to vector<1x256xf32>
    %82 = arith.mulf %25, %81 : vector<1x256xf32>
    %c2_31 = arith.constant 2 : index
    %83 = memref.load %arg6[%c2_31] : memref<4xf32, #tpu.memory_space<smem>>
    %84 = vector.broadcast %83 : f32 to vector<1x256xf32>
    %85 = arith.addf %82, %84 : vector<1x256xf32>
    %c1_32 = arith.constant 1 : index
    %c2_33 = arith.constant 2 : index
    %86 = memref.load %arg5[%c1_32, %c2_33] : memref<2x4xf32, #tpu.memory_space<smem>>
    %87 = vector.broadcast %86 : f32 to vector<1x256xf32>
    %88 = arith.mulf %47, %87 : vector<1x256xf32>
    %89 = arith.addf %85, %88 : vector<1x256xf32>
    %90 = vector.extract_strided_slice %3 {offsets = [2, 0], sizes = [1, 256], strides = [1, 1]} : vector<4x256xf32> to vector<1x256xf32>
    %91 = vector.broadcast %1 : f32 to vector<1x256xf32>
    %92 = arith.mulf %91, %90 : vector<1x256xf32>
    %93 = vector.broadcast %0 : f32 to vector<1x256xf32>
    %94 = arith.mulf %93, %89 : vector<1x256xf32>
    %95 = arith.addf %92, %94 : vector<1x256xf32>
    %c0_34 = arith.constant 0 : index
    %c3_35 = arith.constant 3 : index
    %96 = memref.load %arg5[%c0_34, %c3_35] : memref<2x4xf32, #tpu.memory_space<smem>>
    %97 = vector.broadcast %96 : f32 to vector<1x256xf32>
    %98 = arith.mulf %25, %97 : vector<1x256xf32>
    %c3_36 = arith.constant 3 : index
    %99 = memref.load %arg6[%c3_36] : memref<4xf32, #tpu.memory_space<smem>>
    %100 = vector.broadcast %99 : f32 to vector<1x256xf32>
    %101 = arith.addf %98, %100 : vector<1x256xf32>
    %c1_37 = arith.constant 1 : index
    %c3_38 = arith.constant 3 : index
    %102 = memref.load %arg5[%c1_37, %c3_38] : memref<2x4xf32, #tpu.memory_space<smem>>
    %103 = vector.broadcast %102 : f32 to vector<1x256xf32>
    %104 = arith.mulf %47, %103 : vector<1x256xf32>
    %105 = arith.addf %101, %104 : vector<1x256xf32>
    %106 = vector.extract_strided_slice %3 {offsets = [3, 0], sizes = [1, 256], strides = [1, 1]} : vector<4x256xf32> to vector<1x256xf32>
    %107 = vector.broadcast %1 : f32 to vector<1x256xf32>
    %108 = arith.mulf %107, %106 : vector<1x256xf32>
    %109 = vector.broadcast %0 : f32 to vector<1x256xf32>
    %110 = arith.mulf %109, %105 : vector<1x256xf32>
    %111 = arith.addf %108, %110 : vector<1x256xf32>
    %112 = tpu.concatenate %63, %79, %95, %111 in 0 : vector<1x256xf32>, vector<1x256xf32>, vector<1x256xf32>, vector<1x256xf32> -> vector<4x256xf32>
    %c0_39 = arith.constant 0 : index
    %c0_40 = arith.constant 0 : index
    %c0_41 = arith.constant 0 : index
    %113 = vector.load %arg8[%c0_39, %c0_40, %c0_41] : memref<1x4x256xf32, #tpu.memory_space<vmem>>, vector<1x4x256xf32>
    %114 = vector.shape_cast %113 : vector<1x4x256xf32> to vector<4x256xf32>
    %115 = vector.shape_cast %112 : vector<4x256xf32> to vector<1x4x256xf32>
    tpu.vector_store %arg8[%c0_39, %c0_40, %c0_41], %115 {strides = array<i32>} : memref<1x4x256xf32, #tpu.memory_space<vmem>>, vector<1x4x256xf32>,
    return
  }
  func.func @transform_0(%arg0: i32, %arg1: i32) -> (i32, i32, i32) {
    %c0_i32 = arith.constant 0 : i32
    %c0_i32_0 = arith.constant 0 : i32
    return %arg0, %c0_i32, %arg1 : i32, i32, i32
  }
  func.func @transform_1(%arg0: i32, %arg1: i32) -> (i32, i32) {
    %c0_i32 = arith.constant 0 : i32
    %c0_i32_0 = arith.constant 0 : i32
    %c0_i32_1 = arith.constant 0 : i32
    return %c0_i32, %c0_i32_0 : i32, i32
  }
  func.func @transform_2(%arg0: i32, %arg1: i32) -> i32 {
    %c0_i32 = arith.constant 0 : i32
    %c0_i32_0 = arith.constant 0 : i32
    return %c0_i32 : i32
  }
  func.func @transform_3(%arg0: i32, %arg1: i32) -> (i32, i32) {
    %c0_i32 = arith.constant 0 : i32
    %c0_i32_0 = arith.constant 0 : i32
    %c0_i32_1 = arith.constant 0 : i32
    return %c0_i32, %c0_i32_0 : i32, i32
  }
  func.func @transform_4(%arg0: i32, %arg1: i32) -> i32 {
    %c0_i32 = arith.constant 0 : i32
    %c0_i32_0 = arith.constant 0 : i32
    return %c0_i32 : i32
  }
  func.func @transform_5(%arg0: i32, %arg1: i32) -> i32 {
    %c0_i32 = arith.constant 0 : i32
    %c0_i32_0 = arith.constant 0 : i32
    return %c0_i32 : i32
  }
  func.func @transform_6(%arg0: i32, %arg1: i32) -> (i32, i32, i32) {
    %c0_i32 = arith.constant 0 : i32
    %c0_i32_0 = arith.constant 0 : i32
    return %arg0, %c0_i32, %arg1 : i32, i32, i32
  }
}

</mosaic_0001>

<bundles_post_ra>
// kernel: tpu_custom_call.1
= control target key start
LH: loop header
LB: loop body
LE: loop exit
PB: predicated region body
PF: predicated region fallthrough
CT: control target
= control target key end

     0   :  { %s1339_s0 = inlined_call_operand.hbm [shape: f32[2,4,256], index: 0, kind: input, shape index: {}]   ;;  %s1340_s1 = inlined_call_operand.vmem [shape: f32[4,2], index: 1, kind: input, shape index: {}]   ;;  %s1341_s2 = inlined_call_operand.vmem [shape: f32[2], index: 2, kind: input, shape index: {}]   ;;  %s1342_s3 = inlined_call_operand.vmem [shape: f32[2,4], index: 3, kind: input, shape index: {}]   ;;  %s1343_s4 = inlined_call_operand.vmem [shape: f32[4], index: 4, kind: input, shape index: {}]   ;;  %s1344_s5 = inlined_call_operand.vmem [shape: f32[2], index: 5, kind: input, shape index: {}]   ;;  %s1345_s6 = inlined_call_operand.hbm [shape: f32[2,4,256], index: 6, kind: output, shape index: {}]  }
   0x1   :  { %1349 = sst [smem:[#allocation19_spill]] %s1340_s1 }
   0x2   :  { %1350 = sst [smem:[#allocation20_spill]] %s1341_s2 }
   0x3   :  { %1351 = sst [smem:[#allocation21_spill]] %s1342_s3 }
   0x4   :  { %11 = vsyncpa [#allocation3], 0 }
   0x5   :  { %13 = vsyncpa [#allocation3 + $0x1], 0 }
   0x6   :  { %14 = vsyncpa [#allocation5], 0 }
   0x7   :  { %15 = vsyncpa [#allocation8], 0 }
   0x8   :  { %16 = vsyncpa [#allocation11], 0 }
   0x9   :  { %17 = vsyncpa [#allocation4], 0 }
   0xa   :  { %19 = vsyncpa [#allocation4 + $0x1], 0  ;;  %s1088_s21 = smov 0   ;;  %s1090_s22 = smov 0  }
   0xb   :  { %s1092_s23 = smov 0   ;;  %s1094_s24 = smov 0  }
   0xc   :  { %s1096_s25 = smov 0   ;;  %s1098_s26 = smov 0  }
   0xd LB: > { %s1352_s2 = sld [smem:[#allocation20_spill]]  ;;  %s684_s30 = sadd.s32 4294967295, %s1044_s26   ;;  %s1044_s26 = sphi %s1098_s26, %s25_s26   ;;  %s1040_s25 = sphi %s1096_s25, %s1372_s25   ;;  %s1036_s24 = sphi %s1094_s24, %s1371_s24   ;;  %s1032_s23 = sphi %s1092_s23, %s1370_s23   ;;  %s1028_s22 = sphi %s1090_s22, %s1369_s22   ;;  %s1024_s21 = sphi %s1088_s21, %s1368_s21  }
   0xe   : > { %p686_p0 = scmp.ge.s32.totalorder %s1044_s26, 1  ;;  %p1125_p1 = scmp.eq.s32.totalorder %s684_s30, 0 }
   0xf   : > { %p203_p2 = scmp.lt.s32.totalorder %s1044_s26, 3  ;;  %s249_s11 = sshll.u32 %s1343_s4, 4  ;;  %s250_s11 = int_to_ptr.vmem [resolvable:$true] %s249_s11 }
  0x10   : > { %s1353_s7 = scalar_select %p1125_p1, 1, 0 }
  0x11   : > { %p1130_p3 = pnand %p686_p0, %p203_p2  ;;  %s1355_s1 = sld [smem:[#allocation19_spill]] }
  0x12   : > { %s1357_s3 = sld [smem:[#allocation21_spill]] }
  0x13   : > { %s227_s29 = sshll.u32 %s1352_s2, 4  ;;  %p760_p5 = pneg %p1130_p3  ;;  %s228_s29 = int_to_ptr.vmem [resolvable:$true] %s227_s29 }
  0x14   : > { %s1354_s8 = scalar_select %p1130_p3, 1, 0 }
  0x15   : > { %p1145_p6 = pnand %p760_p5, %p1125_p1  ;;  %s849_s19 = scalar_lea.vmem %s228_s29, 16 }
  0x16   : > { %p850_p7 = scmp.ne.s32.totalorder %s228_s29, %s849_s19  ;;  %p857_p11 = scmp.lt.s32.totalorder %s228_s29, %s228_s29 }
  0x17   : > { %s216_s14 = sshll.u32 %s1355_s1, 4  ;;  %p1156_p8 = pneg %p1145_p6  ;;  %s1149_s14 = int_to_ptr.vmem [resolvable:$true] %s216_s14 }
  0x18   : > { %s238_s18 = sshll.u32 %s1357_s3, 4  ;;  %p858_p12 = scmp.lt.s32.totalorder %s849_s19, %s849_s19  ;;  %s239_s18 = int_to_ptr.vmem [resolvable:$true] %s238_s18 }
  0x19   : > { %p852_p9 = pnand %p1156_p8, %p850_p7 }
  0x1a   : > { %p859_p13 = por %p858_p12, %p857_p11 }
  0x1b   : > { %p853_p10 = pneg %p852_p9 }
  0x1d   : > { %p860_p0 = pnand %p859_p13, %p853_p10 }
  0x1f   : > { %863 = shalt.err (!%p860_p0)
}
  0x20   : > { %s1046_s27 = smov [#allocation7]   ;;  %s864_s28 = scalar_lea.vmem %s250_s11, 16 }
  0x21   : > { %766 = dma.vmem_to_smem (!%p1145_p6), %s228_s29, 16, %s1046_s27, [#allocation8]  }
  0x22   : > { %p865_p2 = scmp.ne.s32.totalorder %s250_s11, %s864_s28  ;;  %p872_p3 = scmp.lt.s32.totalorder %s250_s11, %s250_s11 }
  0x23   : > { %p873_p1 = scmp.lt.s32.totalorder %s864_s28, %s864_s28 }
  0x24   : > { %p867_p5 = pnand %p865_p2, %p1156_p8 }
  0x25   : > { %p874_p7 = por %p873_p1, %p872_p3 }
  0x26   : > { %p868_p4 = pneg %p867_p5 }
  0x28   : > { %p875_p9 = pnand %p874_p7, %p868_p4 }
  0x2a   : > { %878 = shalt.err (!%p875_p9)
}
  0x2b   : > { %s1047_s9 = smov [#allocation10]   ;;  %s879_s10 = scalar_lea.vmem %s1149_s14, 64 }
  0x2c   : > { %772 = dma.vmem_to_smem (!%p1145_p6), %s250_s11, 16, %s1047_s9, [#allocation11]  }
  0x2d   : > { %p880_p10 = scmp.ne.s32.totalorder %s1149_s14, %s879_s10  ;;  %p887_p13 = scmp.lt.s32.totalorder %s1149_s14, %s1149_s14 }
  0x2e   : > { %p888_p0 = scmp.lt.s32.totalorder %s879_s10, %s879_s10 }
  0x2f   : > { %p882_p11 = pnand %p880_p10, %p1156_p8 }
  0x30   : > { %p889_p2 = por %p888_p0, %p887_p13 }
  0x31   : > { %p883_p12 = pneg %p882_p11 }
  0x33   : > { %p890_p1 = pnand %p889_p2, %p883_p12 }
  0x35   : > { %893 = shalt.err (!%p890_p1)
}
  0x36   : > { %s1048_s29 = smov [#allocation6]   ;;  %s894_s11 = scalar_lea.vmem %s239_s18, 32 }
  0x37   : > { %763 = dma.vmem_to_smem (!%p1145_p6), %s1149_s14, 64, %s1048_s29, [#allocation5]  }
  0x38   : > { %p895_p3 = scmp.ne.s32.totalorder %s239_s18, %s894_s11  ;;  %p902_p7 = scmp.lt.s32.totalorder %s239_s18, %s239_s18 }
  0x39   : > { %p903_p9 = scmp.lt.s32.totalorder %s894_s11, %s894_s11 }
  0x3a   : > { %p897_p4 = pnand %p895_p3, %p1156_p8 }
  0x3b   : > { %p904_p10 = por %p903_p9, %p902_p7 }
  0x3c   : > { %p898_p5 = pneg %p897_p4 }
  0x3e   : > { %p905_p11 = pnand %p904_p10, %p898_p5 }
  0x40   : > { %908 = shalt.err (!%p905_p11)
}
  0x41   : > { %s1049_s16 = smov [#allocation9]   ;;  %s260_s19 = sshll.u32 %s1344_s5, 4  ;;  %s261_s19 = int_to_ptr.vmem [resolvable:$true] %s260_s19 }
  0x42   : > { %769 = dma.vmem_to_smem (!%p1145_p6), %s239_s18, 32, %s1049_s16, [#allocation8]  }
  0x43   : > { %s909_s27 = scalar_lea.vmem %s261_s19, 16  ;;  %p917_p2 = scmp.lt.s32.totalorder %s261_s19, %s261_s19 }
  0x44   : > { %p910_p12 = scmp.ne.s32.totalorder %s261_s19, %s909_s27  ;;  %p918_p1 = scmp.lt.s32.totalorder %s909_s27, %s909_s27 }
  0x46   : > { %p912_p13 = pnand %p910_p12, %p1156_p8  ;;  %p919_p3 = por %p918_p1, %p917_p2 }
  0x48   : > { %p913_p0 = pneg %p912_p13 }
  0x4a   : > { %p920_p4 = pnand %p919_p3, %p913_p0 }
  0x4c   : > { %923 = shalt.err (!%p920_p4)
}
  0x4d   : > { %s1050_s28 = smov [#allocation12]   ;;  %s685_s18 = sadd.s32 4294967294, %s1044_s26  }
  0x4e   : > { %775 = dma.vmem_to_smem (!%p1145_p6), %s261_s19, 16, %s1050_s28, [#allocation11]  }
  0x4f   : > { %s37_s20 = sadd.s32 1, %s1040_s25  ;;  %s46_s9 = sadd.s32 1, %s1032_s23 }
  0x50   : > { %p39_p8 = scmp.ge.s32.totalorder %s37_s20, 2  ;;  %p53_p5 = scmp.ne.s32.totalorder %s1032_s23, %s1028_s22 }
  0x51   : > { %p54_p7 = scmp.eq.s32.totalorder %s1044_s26, 0  ;;  %p59_p9 = scmp.ne.s32.totalorder %s1028_s22, %s1024_s21 }
  0x52   : > { %s1374_s20 = smov (%p39_p8, %s37_s20), 0  ;;  %p1360_p11 = scmp.ne.s32.totalorder %s1353_s7, 0 }
  0x53   : > { %p1202_p10 = por %p54_p7, %p53_p5  ;;  %s41_s29 = ssub.s32 %s1040_s25, %s1374_s20 }
  0x54   : > { %p1208_p6 = por %p1360_p11, %p59_p9  ;;  %p190_p12 = scmp.eq.s32.totalorder %s684_s30, 1 }
  0x55   : > { %p44_p13 = scmp.eq.s32.totalorder %s41_s29, 0  ;;  %p196_p0 = scmp.eq.s32.totalorder %s685_s18, 1 }
  0x56   : > { %p1216_p2 = por %p190_p12, %p53_p5  ;;  %p789_p1 = scmp.lt.s32.totalorder %s1044_s26, 2 }
  0x57   : > { %s1222_s13 = scalar_select %p44_p13, %s1032_s23, %s46_s9  }
  0x58   : > { %p1224_p3 = por %p196_p0, %p59_p9  ;;  %s271_s16 = sand.u32 1, %s1032_s23  }
  0x59   : > { %s693_s14 = sshll.u32 %s271_s16, 3  ;;  %s734_s17 = sshll.u32 %s1040_s25, 7 }
  0x5a   : > { %s283_s30 = scalar_lea.hbm %s1339_s0, %s734_s17  ;;  %s275_s28 = scalar_lea.vmem [#allocation2], %s693_s14 }
  0x5b   : > { %s285_s18 = sshll.u32 %s275_s28, 4  ;;  %p1235_p4 = pnand %p789_p1, %p1202_p10  ;;  %s286_s18 = int_to_ptr.vmem [resolvable:$true] %s285_s18 }
  0x5c   : > { %s272_s9 = scalar_lea.sflag [#allocation3], %s271_s16  ;;  %s937_s1 = scalar_lea.vmem %s286_s18, 128 }
  0x5d   : > { %p926_p8 = pneg %p1235_p4  ;;  %p938_p5 = scmp.ne.s32.totalorder %s286_s18, %s937_s1 }
  0x5e   : > { %s1051_s2 = smov [#allocation2]  }
  0x5f   : > { %p940_p7 = pnand %p938_p5, %p926_p8  ;;  %s942_s3 = sshll.u32 %s1051_s2, 4  ;;  %s943_s3 = int_to_ptr.vmem [resolvable:$false] %s942_s3 }
  0x60   : > { %s944_s17 = scalar_lea.vmem %s943_s3, 256  ;;  %p945_p11 = scmp.lt.s32.totalorder %s286_s18, %s943_s3 }
  0x61   : > { %p941_p9 = pneg %p940_p7  ;;  %p946_p12 = scmp.lt.s32.totalorder %s944_s17, %s937_s1 }
  0x63   : > { %p947_p13 = por %p946_p12, %p945_p11 }
  0x65   : > { %p948_p0 = pnand %p947_p13, %p941_p9 }
  0x67   : > { %951 = shalt.err (!%p948_p0)
}
  0x68   : > { %779 = dma.hbm_to_vmem [thread:$0]  (!%p1235_p4), %s283_s30, 128, %s286_s18, %s272_s9  }
  0x69   : > { %p1365_p10 = scmp.ne.s32.totalorder %s1354_s8, 0 }
  0x6a   : > { %s1246_s15 = sand.u32 (!%p1365_p10), 1, %s1028_s22  }
  0x6b   : > { %294 = sbr.rel (%p1365_p10) target bundleno = 180 (0xb4), region = 44  ;;  %s697_s2 = sshll.u32 (!%p1365_p10), %s1246_s15, 3 }
  0x6c   : > { %s297_s16 = scalar_lea.sflag (!%p1365_p10), [#allocation3], %s1246_s15  ;;  %s300_s1 = scalar_lea.vmem (!%p1365_p10), [#allocation2], %s697_s2 }
  0x70   : > { %1003 = dma.done.wait (%p1208_p6), %s297_s16, 128  }
  0x71   : > { %1005 = vsyncadd (%p1208_p6), %s297_s16, 4294967168  ;;  %p1366_p1 = scmp.ne.s32.totalorder %s1353_s7, 0 }
  0x73   : > { %1007 = dma.done.wait (%p1366_p1), [#allocation5], 64  }
  0x74   : > { %1009 = vsyncadd (%p1366_p1), [#allocation5], 4294967232 }
  0x75   : > { %1011 = dma.done.wait (%p1366_p1), [#allocation8], 48  }
  0x76   : > { %1013 = vsyncadd (%p1366_p1), [#allocation8], 4294967248 }
  0x77   : > { %1015 = dma.done.wait (%p1366_p1), [#allocation11], 32  }
  0x78   : > { %1017 = vsyncadd (%p1366_p1), [#allocation11], 4294967264 }
  0x79   : > { %325 = sfence }
  0x7a   : > { %s1268_s3 = sld [smem:[#allocation12]]  ;;  %v1272_v0 = vld [vmem:[%s300_s1] sm:$0xff]  ;;  %v476_v35 = vlaneseq  ;;  %vm519_vm0 = vcmask 1040384   ;;  %vm522_vm1 = vcmask 1041408   ;;  %vm525_vm2 = vcmask 1042432  }
  0x7b   : > { %s1270_s8 = sld [smem:[#allocation12 + $0x1]] }
  0x7c   : > { %s355_s10 = sld [smem:[#allocation6]]  ;;  %v477_v48 = vshrl.u32 %v476_v35, 7 }
  0x7d   : > { %s358_s14 = sld [smem:[#allocation7]] }
  0x7e   : > { %s705_s19 = sld [smem:[#allocation6 + $0x80]]  ;;  %v478_v63 = vsub.s32 0, %v477_v48 }
  0x7f   : > { %s707_s27 = sld [smem:[#allocation6 + $0x100]] }
  0x80   : > { %s709_s30 = sld [smem:[#allocation6 + $0x180]]  ;;  %v427_v50 = vstv %s1268_s3  ;;  %s735_s3 = sshll.u32 %s1036_s24, 7 }
  0x81   : > { %s711_s28 = sld [smem:[#allocation6 + $0x1]]  ;;  %v425_v40 = vstv %s1270_s8  ;;  %s349_s8 = scalar_lea.vmem [#allocation13], %s697_s2 }
  0x82   : > { %v356_v1 = vstv %s355_s10  ;;  %s712_s18 = sld [smem:[#allocation7 + $0x1]]  ;;  %v426_v53 = vmul.f32 %v425_v40, %v1272_v0 }
  0x83   : > { %v357_v2 = vmul.f32 %v356_v1, %v1272_v0  ;;  %v359_v3 = vstv %s358_s14  ;;  %s713_s7 = sld [smem:[#allocation6 + $0x81]]  ;;  %v482_v1 = vsub.s32 4, %v477_v48 }
  0x84   : > { %v362_v4 = vstv %s705_s19  ;;  %s715_s29 = sld [smem:[#allocation6 + $0x101]] }
  0x85   : > { %v360_v5 = vadd.f32 %v359_v3, %v357_v2  ;;  %v363_v6 = vmul.f32 %v362_v4, %v1272_v0  ;;  %v370_v7 = vstv %s707_s27  ;;  %s717_s9 = sld [smem:[#allocation6 + $0x181]] }
  0x86   : > { %v371_v8 = vmul.f32 %v370_v7, %v1272_v0  ;;  %v378_v9 = vstv %s709_s30  ;;  %s1277_s17 = sld [smem:[#allocation9]]  ;;  %v489_v7 = vsub.s32 1, %v477_v48 }
  0x87   : > { %v706_v10 = vrot.slane %v363_v6, 9  ;;  %v379_v11 = vmul.f32 %v378_v9, %v1272_v0  ;;  %v386_v12 = vstv %s711_s28  ;;  %s1280_s16 = sld [smem:[#allocation10]] }
  0x88   : > { %v708_v13 = vrot.slane %v371_v8, 10  ;;  %v387_v14 = vmul.f32 %v386_v12, %v1272_v0  ;;  %v389_v15 = vstv %s712_s18  ;;  %s1283_s1 = sld [smem:[#allocation9 + $0x80]]  ;;  %v500_v12 = vsub.s32 2, %v477_v48 }
  0x89   : > { %v368_v16 = vadd.f32 %v706_v10, %v360_v5  ;;  %v710_v17 = vrot.slane %v379_v11, 11  ;;  %v392_v18 = vstv %s713_s7  ;;  %s720_s10 = sld [smem:[#allocation9 + $0x1]]  ;;  %v493_v10 = vsub.s32 5, %v477_v48 }
  0x8a   : > { %v390_v19 = vadd.f32 %v389_v15, %v387_v14  ;;  %v393_v20 = vmul.f32 %v392_v18, %v1272_v0  ;;  %v400_v21 = vstv %s715_s29  ;;  %s721_s14 = sld [smem:[#allocation10 + $0x1]] }
  0x8b   : > { %v376_v22 = vadd.f32 %v708_v13, %v368_v16  ;;  %v401_v23 = vmul.f32 %v400_v21, %v1272_v0  ;;  %v408_v24 = vstv %s717_s9  ;;  %s1287_s19 = sld [smem:[#allocation9 + $0x81]]  ;;  %v504_v13 = vsub.s32 6, %v477_v48  ;;  %s550_s9 = sshll.u32 %s349_s8, 4  ;;  %s551_s9 = int_to_ptr.vmem [resolvable:$true] %s550_s9 }
  0x8c   : > { %v714_v25 = vrot.slane %v393_v20, 9  ;;  %v409_v26 = vmul.f32 %v408_v24, %v1272_v0  ;;  %v416_v27 = vstv %s1277_s17  ;;  %s723_s27 = sld [smem:[#allocation9 + $0x2]] }
  0x8d   : > { %v384_v28 = vadd.f32 %v710_v17, %v376_v22  ;;  %v716_v29 = vrot.slane %v401_v23, 10  ;;  %s724_s30 = sld [smem:[#allocation10 + $0x2]]  ;;  %v419_v33 = vstv %s1280_s16  ;;  %v515_v23 = vsub.s32 7, %v477_v48 }
  0x8e   : > { %v398_v30 = vadd.f32 %v714_v25, %v390_v19  ;;  %v718_v31 = vrot.slane %v409_v26, 11  ;;  %s725_s28 = sld [smem:[#allocation9 + $0x82]]  ;;  %v422_v39 = vstv %s1283_s1  ;;  %v511_v19 = vsub.s32 3, %v477_v48  ;;  %s548_s1 = scalar_lea.hbm %s1345_s6, %s735_s3 }
  0x8f   : > { %v417_v32 = vmul.f32 %v416_v27, %v384_v28  ;;  %v431_v34 = vstv %s720_s10  ;;  %s726_s18 = sld [smem:[#allocation9 + $0x3]]  ;;  %s534_s10 = scalar_lea.sflag [#allocation4], %s1246_s15 }
  0x90   : > { %v406_v36 = vadd.f32 %v716_v29, %v398_v30  ;;  %v432_v37 = vmul.f32 %v431_v34, %v384_v28  ;;  %v434_v38 = vstv %s721_s14  ;;  %s727_s7 = sld [smem:[#allocation10 + $0x3]]  ;;  %s952_s14 = scalar_lea.vmem %s551_s9, 128 }
  0x91   : > { %v437_v41 = vstv %s1287_s19  ;;  %s728_s29 = sld [smem:[#allocation9 + $0x83]]  ;;  %v420_v43 = vadd.f32 %v419_v33, %v417_v32  ;;  %p953_p6 = scmp.ne.s32.totalorder %s551_s9, %s952_s14 }
  0x92   : > { %v414_v42 = vadd.f32 %v718_v31, %v406_v36  ;;  %v435_v44 = vadd.f32 %v434_v38, %v432_v37  ;;  %v446_v45 = vstv %s723_s27  ;;  %s1052_s19 = smov [#allocation13]  }
  0x93   : > { %v447_v46 = vmul.f32 %v446_v45, %v384_v28  ;;  %v449_v47 = vstv %s724_s30  ;;  %p954_p4 = pnand %p953_p6, %p1216_p2  ;;  %s956_s24 = sshll.u32 %s1052_s19, 4  ;;  %s957_s24 = int_to_ptr.vmem [resolvable:$false] %s956_s24 }
  0x94   : > { %v423_v49 = vmul.f32 %v422_v39, %v414_v42  ;;  %v438_v51 = vmul.f32 %v437_v41, %v414_v42  ;;  %v452_v52 = vstv %s725_s28  ;;  %s958_s2 = scalar_lea.vmem %s957_s24, 256  ;;  %p959_p5 = scmp.lt.s32.totalorder %s551_s9, %s957_s24 }
  0x95   : > { %v450_v54 = vadd.f32 %v449_v47, %v447_v46  ;;  %v453_v55 = vmul.f32 %v452_v52, %v414_v42  ;;  %v461_v56 = vstv %s726_s18  ;;  %p955_p8 = pneg %p954_p4  ;;  %p960_p7 = scmp.lt.s32.totalorder %s958_s2, %s952_s14 }
  0x96   : > { %v424_v57 = vadd.f32 %v423_v49, %v420_v43  ;;  %v439_v58 = vadd.f32 %v438_v51, %v435_v44  ;;  %v462_v59 = vmul.f32 %v461_v56, %v384_v28  ;;  %v464_v60 = vstv %s727_s7 }
  0x97   : > { %v454_v61 = vadd.f32 %v453_v55, %v450_v54  ;;  %v467_v62 = vstv %s728_s29  ;;  %p961_p9 = por %p960_p7, %p959_p5 }
  0x98   : > { %v428_v2 = vmul.f32 %v427_v50, %v424_v57  ;;  %v440_v3 = vmul.f32 %v439_v58, %v427_v50  ;;  %v465_v4 = vadd.f32 %v464_v60, %v462_v59  ;;  %v468_v5 = vmul.f32 %v467_v62, %v414_v42 }
  0x99   : > { %v455_v6 = vmul.f32 %v454_v61, %v427_v50  ;;  %p962_p11 = pnand %p961_p9, %p955_p8 }
  0x9a   : > { %v429_v8 = vadd.f32 %v428_v2, %v426_v53  ;;  %v442_v9 = vrot.slane %v440_v3, 7  ;;  %v469_v0 = vadd.f32 %v468_v5, %v465_v4 }
  0x9b   : > { %v457_v11 = vrot.slane %v455_v6, 6 }
  0x9c   : > { %v444_v14 = vadd.f32 %v442_v9, %v426_v53  ;;  %v470_v15 = vmul.f32 %v469_v0, %v427_v50  ;;  %v479_v16 = vrot.slane %v429_v8, %v478_v63  ;;  %v483_v17 = vrot.slane %v429_v8, %v482_v1 }
  0x9d   : > { %v459_v18 = vadd.f32 %v457_v11, %v426_v53 }
  0x9e   : > { %v472_v20 = vrot.slane %v470_v15, 5  ;;  %v490_v21 = vrot.slane %v444_v14, %v489_v7  ;;  %v494_v22 = vrot.slane %v444_v14, %v493_v10 }
  0x9f   : > { %v501_v24 = vrot.slane %v459_v18, %v500_v12  ;;  %v505_v25 = vrot.slane %v459_v18, %v504_v13 }
  0xa0   : > { %v474_v26 = vadd.f32 %v472_v20, %v426_v53  ;;  %v520_v27 = vsel %vm519_vm0, %v479_v16, %v490_v21  ;;  %v521_v28 = vsel %vm519_vm0, %v483_v17, %v494_v22 }
  0xa1   : > { %v523_v29 = vsel %vm522_vm1, %v520_v27, %v501_v24  ;;  %v524_v30 = vsel %vm522_vm1, %v521_v28, %v505_v25 }
  0xa2   : > { %v512_v31 = vrot.slane %v474_v26, %v511_v19  ;;  %v516_v32 = vrot.slane %v474_v26, %v515_v23 }
  0xa4   : > { %v526_v33 = vsel %vm525_vm2, %v523_v29, %v512_v31  ;;  %v527_v34 = vsel %vm525_vm2, %v524_v30, %v516_v32 }
  0xa5   : > { %v530_v35 = vcombine.low %v526_v33, %v527_v34 }
  0xa7   : > { %532 = vst [vmem:[%s349_s8] sm:$0xff] %v530_v35 }
  0xa8   : > { %965 = shalt.err (!%p962_p11)
}
  0xa9   : > { %s966_s27 = scalar_lea.hbm %s548_s1, 128  ;;  %s970_s28 = scalar_lea.hbm %s1345_s6, 256 }
  0xaa   : > { %p967_p12 = scmp.ne.s32.totalorder %s548_s1, %s966_s27  ;;  %p971_p10 = scmp.lt.s32.totalorder %s548_s1, %s1345_s6 }
  0xab   : > { %p972_p1 = scmp.lt.s32.totalorder %s970_s28, %s966_s27 }
  0xac   : > { %p968_p13 = pnand %p967_p12, %p1216_p2 }
  0xad   : > { %p973_p6 = por %p972_p1, %p971_p10 }
  0xae   : > { %p969_p0 = pneg %p968_p13 }
  0xb0   : > { %p974_p4 = pnand %p973_p6, %p969_p0 }
  0xb2   : > { %977 = shalt.err (!%p974_p4)
}
  0xb3   : > { %758 = dma.vmem_to_hbm [thread:$0]  (%p1216_p2), %s551_s9, 128, %s548_s1, %s534_s10  }
  0xb4 PF: > { %s562_s29 = sand.u32 1, %s1024_s21   ;;  %p1367_p8 = scmp.ge.s32.totalorder %s1044_s26, 2 }
  0xb5   : > { %s563_s3 = scalar_lea.sflag [#allocation4], %s562_s29 }
  0xb6   : > { %p781_p5 = pnand %p1367_p8, %p1224_p3 }
  0xb8   : > { %p782_p7 = pneg %p781_p5 }
  0xba   : > { %1019 = dma.done.wait (%p782_p7), %s563_s3, 128  }
  0xbb   : > { %1021 = vsyncadd (%p782_p7), %s563_s3, 4294967168  ;;  %s25_s26 = sadd.s32 1, %s1044_s26   ;;  %s1368_s21 = smov %s1028_s22 }
  0xbc   : > { %p22_p9 = scmp.ge.s32.totalorder %s25_s26, 4   ;;  %s1369_s22 = smov %s1032_s23 }
  0xbd   : > { %s1370_s23 = smov %s1222_s13  ;;  %s1371_s24 = smov %s1040_s25 }
  0xbe   : > { %s1372_s25 = smov %s1374_s20  ;;  %24 = sbr.rel (!%p22_p9) target bundleno = 13 (0xd), region = 110 }
  0xc3   :  { %568 = vsyncpa [#allocation3], 1 }
  0xc4   :  { %570 = vsyncpa [#allocation3 + $0x1], 1 }
  0xc5   :  { %571 = vsyncpa [#allocation4], 1 }
  0xc6   :  { %573 = vsyncpa [#allocation4 + $0x1], 1 }
  0xc7   :  { %574 = vsyncpa [#allocation5], 1 }
  0xc8   :  { %576 = vsyncpa [#allocation5 + $0x1], 1 }
  0xc9   :  { %577 = vsyncpa [#allocation8], 1 }
  0xca   :  { %578 = vsyncpa [#allocation11], 1 }

</bundles_post_ra>
